<compile_context>
chip_gen: v5e
topology: v5e:2x2
jax: 0.10.0
libtpu: 0.0.40
codegen_flags: <defaults>
</compile_context>

<pallas_src>
import functools

import jax
import jax.numpy as jnp
from jax.experimental import pallas as pl
from jax.experimental.pallas import tpu as pltpu


def _round_up(x, m):
    return ((x + m - 1) // m) * m


def _pick_tile(dim, max_tile, align):
    """Largest multiple of `align` <= max_tile that divides `dim` (dim % align == 0)."""
    t = max(align, (min(max_tile, dim) // align) * align)
    while dim % t != 0:
        t -= align
    return t


def _patch_embed_kernel(x_ref, w_ref, b_ref, o_ref, acc_ref):
    # x_ref: (tm, tk), w_ref: (tk, tn), b_ref: (1, tn), o_ref: (tm, tn),
    # acc_ref: (tm, tn) f32 scratch persistent across the K (reduction) axis.
    k = pl.program_id(2)

    @pl.when(k == 0)
    def _():
        acc_ref[...] = jnp.zeros_like(acc_ref)

    acc_ref[...] += jnp.dot(
        x_ref[...], w_ref[...], preferred_element_type=jnp.float32
    )

    @pl.when(k == pl.num_programs(2) - 1)
    def _():
        o_ref[...] = (acc_ref[...] + b_ref[...].astype(jnp.float32)).astype(
            o_ref.dtype
        )


def patch_embed_matmul(patches, w, b, *, out_dtype,
                       tm_max=512, tn_max=256, tk_max=512):
    """patches: (M, K), w: (K, N), b: (N,) f32 -> (M, N) in out_dtype."""
    M, K = patches.shape
    Kw, N = w.shape
    assert Kw == K and b.shape == (N,)

    # --- pad to TPU-friendly tiles ------------------------------------------
    # M: sublane axis; tile up to tm_max (multiple of 16 for bf16 packing),
    # pad M up to a multiple of the tile.
    tm = min(tm_max, _round_up(M, 16))
    M_pad = _round_up(M, tm)
    # K / N: lane axes; pad to multiples of 128 (lane-dense loads/stores), then
    # pick the largest dividing tile (256-multiples preferred on v6e/v7x MXU).
    K_pad = _round_up(K, 128)
    N_pad = _round_up(N, 128)
    tk = _pick_tile(K_pad, tk_max, 128)
    tn = _pick_tile(N_pad, tn_max, 128)

    x_p = patches
    if (M_pad, K_pad) != (M, K):
        x_p = jnp.pad(patches, ((0, M_pad - M), (0, K_pad - K)))
    w_p = w
    if (K_pad, N_pad) != (K, N):
        w_p = jnp.pad(w, ((0, K_pad - K), (0, N_pad - N)))
    b_p = b.astype(jnp.float32)
    if N_pad != N:
        b_p = jnp.pad(b_p, (0, N_pad - N))
    b_p = b_p.reshape(1, N_pad)

    grid = (M_pad // tm, N_pad // tn, K_pad // tk)

    in_itemsize = jnp.dtype(x_p.dtype).itemsize
    out_itemsize = jnp.dtype(out_dtype).itemsize
    cost = pl.CostEstimate(
        flops=2 * M_pad * N_pad * K_pad,
        transcendentals=0,
        bytes_accessed=(M_pad * K_pad * in_itemsize
                        + K_pad * N_pad * in_itemsize
                        + N_pad * 4
                        + M_pad * N_pad * out_itemsize),
    )

    out = pl.pallas_call(
        _patch_embed_kernel,
        out_shape=jax.ShapeDtypeStruct((M_pad, N_pad), out_dtype),
        grid_spec=pltpu.PrefetchScalarGridSpec(
            num_scalar_prefetch=0,
            grid=grid,
            in_specs=[
                pl.BlockSpec((tm, tk), lambda i, j, k: (i, k)),
                pl.BlockSpec((tk, tn), lambda i, j, k: (k, j)),
                pl.BlockSpec((1, tn), lambda i, j, k: (0, j)),
            ],
            out_specs=pl.BlockSpec((tm, tn), lambda i, j, k: (i, j)),
            scratch_shapes=[pltpu.VMEM((tm, tn), jnp.float32)],
        ),
        compiler_params=pltpu.CompilerParams(
            dimension_semantics=("parallel", "parallel", "arbitrary"),
        ),
        cost_estimate=cost,
    )(x_p, w_p, b_p)

    if (M_pad, N_pad) != (M, N):
        out = out[:M, :N]
    return out


def patch_embed_forward(x, w_conv, b_conv, patch_size,
                        compute_dtype=jnp.bfloat16):
    """x: (B, C, H, W) NCHW; w_conv: (E, C, ph, pw); b_conv: (E,).

    Returns (B, num_patches, E), exactly like
    PatchEmbed.forward: proj(x).flatten(2).transpose(1, 2).
    """
    B, C, H, W = x.shape
    ph, pw = patch_size
    E = w_conv.shape[0]
    assert H % ph == 0 and W % pw == 0
    gh, gw = H // ph, W // pw
    num_patches = gh * gw
    out_dtype = x.dtype

    if compute_dtype is not None:
        # bf16 operands (f32 accumulate in-kernel): ~2-4x MXU throughput on
        # v6e/v7x and half the HBM bytes moved for the patch tensor.
        x = x.astype(compute_dtype)
        w_conv = w_conv.astype(compute_dtype)

    # Non-overlapping patch extraction: (B, C, gh, ph, gw, pw) ->
    # (B, gh, gw, C, ph, pw) so the inner order matches the conv weight (C, kh, kw).
    # TODO(synk): pull patch extraction into the kernel (grid over (B, gh) with
    # strip-wise BlockSpecs) to avoid the extra HBM round trip if XLA does not
    # fuse this transpose into the pad/copy feeding the kernel.
    xp = x.reshape(B, C, gh, ph, gw, pw)
    xp = jnp.transpose(xp, (0, 2, 4, 1, 3, 5))
    patches = xp.reshape(B * num_patches, C * ph * pw)

    # Flatten conv weight to (C*ph*pw, E).
    w_mat = w_conv.reshape(E, C * ph * pw).T

    out = patch_embed_matmul(patches, w_mat, b_conv.astype(jnp.float32),
                             out_dtype=out_dtype)
    return out.reshape(B, num_patches, E)


if __name__ == "__main__":
    # Small, shape-consistent config: img 16x16, patch 4x4, 4 channels, dim 32
    B, C, H, W = 2, 4, 16, 16
    patch_size = (4, 4)
    embed_dim = 32

    key = jax.random.PRNGKey(0)
    kx, kw, kb = jax.random.split(key, 3)
    x = jax.random.normal(kx, (B, C, H, W), dtype=jnp.float32)
    w_conv = jax.random.normal(
        kw, (embed_dim, C, patch_size[0], patch_size[1]), dtype=jnp.float32
    ) * 0.02
    b_conv = jax.random.normal(kb, (embed_dim,), dtype=jnp.float32) * 0.02

    # Plain-JAX reference of the stride==kernel conv (f32).
    ref = jax.lax.conv_general_dilated(
        x, w_conv, window_strides=patch_size, padding="VALID",
        dimension_numbers=("NCHW", "OIHW", "NCHW"),
    ) + b_conv.reshape(1, embed_dim, 1, 1)
    ref = ref.reshape(B, embed_dim, -1).transpose(0, 2, 1)

    num_patches = (H // patch_size[0]) * (W // patch_size[1])

    # f32-operand path: exact check.
    fwd_f32 = jax.jit(functools.partial(
        patch_embed_forward, patch_size=patch_size, compute_dtype=None))
    out_f32 = jax.block_until_ready(fwd_f32(x, w_conv, b_conv))
    assert out_f32.shape == (B, num_patches, embed_dim)
    assert jnp.allclose(out_f32, ref, atol=1e-4, rtol=1e-4)

    # Default bf16-operand path (MXU-friendly): looser tolerance vs f32 ref.
    fwd = jax.jit(functools.partial(patch_embed_forward, patch_size=patch_size))
    out = jax.block_until_ready(fwd(x, w_conv, b_conv))
    assert out.shape == (B, num_patches, embed_dim)
    assert jnp.allclose(out, ref, atol=2e-2, rtol=2e-2)

    print("KERNEL_OK")
</pallas_src>

<mosaic_0001>
module attributes {stable_mosaic.version = 11 : i64} {
  func.func @_patch_embed_kernel(%arg0: i32, %arg1: i32, %arg2: i32, %arg3: memref<32x128xf32, #tpu.memory_space<vmem>>, %arg4: memref<128x128xf32, #tpu.memory_space<vmem>>, %arg5: memref<1x128xf32, #tpu.memory_space<vmem>>, %arg6: memref<32x128xf32, #tpu.memory_space<vmem>>, %arg7: memref<32x128xf32, #tpu.memory_space<vmem>>) attributes {dimension_semantics = [#tpu.dimension_semantics<parallel>, #tpu.dimension_semantics<parallel>, #tpu.dimension_semantics<arbitrary>], iteration_bounds = array<i64: 1, 1, 1>, scalar_prefetch = 0 : i64, scratch_operands = 1 : i64, tpu.core_type = #tpu.core_type<tc>, window_params = [{transform_indices = @transform_0, window_bounds = array<i64: 32, 128>}, {transform_indices = @transform_1, window_bounds = array<i64: 128, 128>}, {transform_indices = @transform_2, window_bounds = array<i64: 1, 128>}, {transform_indices = @transform_3, window_bounds = array<i64: 32, 128>}]} {
    %c0_i32 = arith.constant 0 : i32
    %0 = arith.cmpi eq, %arg2, %c0_i32 : i32
    %1 = arith.extui %0 : i1 to i32
    %c0_i32_0 = arith.constant 0 : i32
    %2 = arith.cmpi ne, %1, %c0_i32_0 : i32
    scf.if %2 {
      %cst_10 = arith.constant 0.000000e+00 : f32
      %12 = vector.broadcast %cst_10 : f32 to vector<32x128xf32>
      %c0_11 = arith.constant 0 : index
      %c0_12 = arith.constant 0 : index
      %13 = vector.load %arg7[%c0_11, %c0_12] : memref<32x128xf32, #tpu.memory_space<vmem>>, vector<32x128xf32>
      tpu.vector_store %arg7[%c0_11, %c0_12], %12 {strides = array<i32>} : memref<32x128xf32, #tpu.memory_space<vmem>>, vector<32x128xf32>,
    } else {
    }
    %c0 = arith.constant 0 : index
    %c0_1 = arith.constant 0 : index
    %3 = vector.load %arg7[%c0, %c0_1] : memref<32x128xf32, #tpu.memory_space<vmem>>, vector<32x128xf32>
    %c0_2 = arith.constant 0 : index
    %c0_3 = arith.constant 0 : index
    %4 = vector.load %arg3[%c0_2, %c0_3] : memref<32x128xf32, #tpu.memory_space<vmem>>, vector<32x128xf32>
    %c0_4 = arith.constant 0 : index
    %c0_5 = arith.constant 0 : index
    %5 = vector.load %arg4[%c0_4, %c0_5] : memref<128x128xf32, #tpu.memory_space<vmem>>, vector<128x128xf32>
    %cst = arith.constant dense<0.000000e+00> : vector<32x128xf32>
    %6 = tpu.matmul %4, %5, %cst {dimension_numbers = #tpu.dot_dimension_numbers<[1], [0], [0], [1], [0, 0, 1, 1], [], []>} : vector<32x128xf32>, vector<128x128xf32>, vector<32x128xf32> -> vector<32x128xf32>
    %7 = arith.addf %3, %6 : vector<32x128xf32>
    %c0_6 = arith.constant 0 : index
    %c0_7 = arith.constant 0 : index
    %8 = vector.load %arg7[%c0_6, %c0_7] : memref<32x128xf32, #tpu.memory_space<vmem>>, vector<32x128xf32>
    tpu.vector_store %arg7[%c0_6, %c0_7], %7 {strides = array<i32>} : memref<32x128xf32, #tpu.memory_space<vmem>>, vector<32x128xf32>,
    %c0_i32_8 = arith.constant 0 : i32
    %9 = arith.cmpi eq, %arg2, %c0_i32_8 : i32
    %10 = arith.extui %9 : i1 to i32
    %c0_i32_9 = arith.constant 0 : i32
    %11 = arith.cmpi ne, %10, %c0_i32_9 : i32
    scf.if %11 {
      %c0_10 = arith.constant 0 : index
      %c0_11 = arith.constant 0 : index
      %12 = vector.load %arg7[%c0_10, %c0_11] : memref<32x128xf32, #tpu.memory_space<vmem>>, vector<32x128xf32>
      %c0_12 = arith.constant 0 : index
      %c0_13 = arith.constant 0 : index
      %13 = vector.load %arg5[%c0_12, %c0_13] : memref<1x128xf32, #tpu.memory_space<vmem>>, vector<1x128xf32>
      %14 = vector.broadcast %13 : vector<1x128xf32> to vector<32x128xf32>
      %15 = arith.addf %12, %14 : vector<32x128xf32>
      %c0_14 = arith.constant 0 : index
      %c0_15 = arith.constant 0 : index
      %16 = vector.load %arg6[%c0_14, %c0_15] : memref<32x128xf32, #tpu.memory_space<vmem>>, vector<32x128xf32>
      tpu.vector_store %arg6[%c0_14, %c0_15], %15 {strides = array<i32>} : memref<32x128xf32, #tpu.memory_space<vmem>>, vector<32x128xf32>,
    } else {
    }
    return
  }
  func.func @transform_0(%arg0: i32, %arg1: i32, %arg2: i32) -> (i32, i32) {
    %c0_i32 = arith.constant 0 : i32
    return %arg0, %arg2 : i32, i32
  }
  func.func @transform_1(%arg0: i32, %arg1: i32, %arg2: i32) -> (i32, i32) {
    %c0_i32 = arith.constant 0 : i32
    return %arg2, %arg1 : i32, i32
  }
  func.func @transform_2(%arg0: i32, %arg1: i32, %arg2: i32) -> (i32, i32) {
    %c0_i32 = arith.constant 0 : i32
    %c0_i32_0 = arith.constant 0 : i32
    return %c0_i32, %arg1 : i32, i32
  }
  func.func @transform_3(%arg0: i32, %arg1: i32, %arg2: i32) -> (i32, i32) {
    %c0_i32 = arith.constant 0 : i32
    return %arg0, %arg1 : i32, i32
  }
}

</mosaic_0001>

<bundles_post_ra>
// kernel: patch_embed_forward.1
= control target key start
LH: loop header
LB: loop body
LE: loop exit
PB: predicated region body
PF: predicated region fallthrough
CT: control target
= control target key end

     0   :  { %s288_s0 = inlined_call_operand.vmem [shape: f32[32,128], index: 0, kind: input, shape index: {}]   ;;  %s289_s1 = inlined_call_operand.vmem [shape: f32[128,128], index: 1, kind: input, shape index: {}]   ;;  %s290_s2 = inlined_call_operand.vmem [shape: f32[1,128], index: 2, kind: input, shape index: {}]   ;;  %s291_s3 = inlined_call_operand.hbm [shape: f32[32,128], index: 3, kind: output, shape index: {}]  }
   0x1   :  { %v46_v0 = vld [vmem:[%s289_s1 + $0x78] sm:$0xff]  ;;  %v45_v1 = vld [vmem:[%s289_s1 + $0x70] sm:$0xff]  ;;  %v44_v2 = vld [vmem:[%s289_s1 + $0x68] sm:$0xff] }
   0x2   :  { %122 = vmatpush.msra.mxu2 %v46_v0  ;;  %123 = vmatpush.msra.mxu3 %v46_v0  ;;  %v43_v3 = vld [vmem:[%s289_s1 + $0x60] sm:$0xff]  ;;  %v42_v4 = vld [vmem:[%s289_s1 + $0x58] sm:$0xff] }
   0x3   :  { %47 = vmatpush.msra.mxu0 %v46_v0  ;;  %121 = vmatpush.msra.mxu1 %v46_v0 }
   0x4   :  { %125 = vmatpush.msra.mxu2 %v45_v1  ;;  %126 = vmatpush.msra.mxu3 %v45_v1 }
   0x5   :  { %48 = vmatpush.msra.mxu0 %v45_v1  ;;  %124 = vmatpush.msra.mxu1 %v45_v1 }
   0x6   :  { %128 = vmatpush.msra.mxu2 %v44_v2  ;;  %129 = vmatpush.msra.mxu3 %v44_v2 }
   0x7   :  { %49 = vmatpush.msra.mxu0 %v44_v2  ;;  %127 = vmatpush.msra.mxu1 %v44_v2 }
   0x8   :  { %131 = vmatpush.msra.mxu2 %v43_v3  ;;  %132 = vmatpush.msra.mxu3 %v43_v3 }
   0x9   :  { %8 = vsyncpa [#allocation4], 0  ;;  %v41_v5 = vld [vmem:[%s289_s1 + $0x50] sm:$0xff]  ;;  %50 = vmatpush.msra.mxu0 %v43_v3  ;;  %130 = vmatpush.msra.mxu1 %v43_v3  ;;  %v40_v6 = vld [vmem:[%s289_s1 + $0x48] sm:$0xff]  ;;  %s199_s26 = smov [#allocation3]   ;;  %s201_s30 = smov 8  }
   0xa   :  { %134 = vmatpush.msra.mxu2 %v42_v4  ;;  %135 = vmatpush.msra.mxu3 %v42_v4  ;;  %v39_v7 = vld [vmem:[%s289_s1 + $0x40] sm:$0xff]  ;;  %v38_v8 = vld [vmem:[%s289_s1 + $0x38] sm:$0xff]  ;;  %v37_v9 = vld [vmem:[%s289_s1 + $0x30] sm:$0xff]  ;;  %s107_s27 = sshll.u32 %s199_s26, 4  ;;  %s108_s27 = int_to_ptr.vmem [resolvable:$true] %s107_s27 }
   0xb   :  { %51 = vmatpush.msra.mxu0 %v42_v4  ;;  %133 = vmatpush.msra.mxu1 %v42_v4  ;;  %v36_v10 = vld [vmem:[%s289_s1 + $0x28] sm:$0xff]  ;;  %v35_v11 = vld [vmem:[%s289_s1 + $0x20] sm:$0xff]  ;;  %v34_v12 = vld [vmem:[%s289_s1 + $0x18] sm:$0xff] }
   0xc   :  { %137 = vmatpush.msra.mxu2 %v41_v5  ;;  %138 = vmatpush.msra.mxu3 %v41_v5  ;;  %v33_v13 = vld [vmem:[%s289_s1 + $0x10] sm:$0xff]  ;;  %v32_v14 = vld [vmem:[%s289_s1 + $0x8] sm:$0xff]  ;;  %v31_v15 = vld [vmem:[%s289_s1] sm:$0xff] }
   0xd   :  { %52 = vmatpush.msra.mxu0 %v41_v5  ;;  %136 = vmatpush.msra.mxu1 %v41_v5  ;;  %v29_v16 = vld [vmem:[%s288_s0 + $0x10] sm:$0xff]  ;;  %v30_v17 = vld [vmem:[%s288_s0 + $0x18] sm:$0xff]  ;;  %v27_v18 = vld [vmem:[%s288_s0] sm:$0xff] }
   0xe   :  { %140 = vmatpush.msra.mxu2 %v40_v6  ;;  %141 = vmatpush.msra.mxu3 %v40_v6  ;;  %v28_v19 = vld [vmem:[%s288_s0 + $0x8] sm:$0xff]  ;;  %v172_v20 = vld [vmem:[%s290_s2] ss:$0 sm:$0xff]  ;;  %s109_s0 = sshll.u32 %s291_s3, 4  ;;  %s200_s2 = smov 128   ;;  %s110_s0 = int_to_ptr.hbm [resolvable:$true] %s109_s0 }
   0xf   :  { %53 = vmatpush.msra.mxu0 %v40_v6  ;;  %139 = vmatpush.msra.mxu1 %v40_v6 }
  0x10   :  { %143 = vmatpush.msra.mxu2 %v39_v7  ;;  %144 = vmatpush.msra.mxu3 %v39_v7 }
  0x11   :  { %54 = vmatpush.msra.mxu0 %v39_v7  ;;  %142 = vmatpush.msra.mxu1 %v39_v7 }
  0x12   :  { %146 = vmatpush.msra.mxu2 %v38_v8  ;;  %147 = vmatpush.msra.mxu3 %v38_v8 }
  0x13   :  { %55 = vmatpush.msra.mxu0 %v38_v8  ;;  %145 = vmatpush.msra.mxu1 %v38_v8 }
  0x14   :  { %149 = vmatpush.msra.mxu2 %v37_v9  ;;  %150 = vmatpush.msra.mxu3 %v37_v9 }
  0x15   :  { %56 = vmatpush.msra.mxu0 %v37_v9  ;;  %148 = vmatpush.msra.mxu1 %v37_v9 }
  0x16   :  { %152 = vmatpush.msra.mxu2 %v36_v10  ;;  %153 = vmatpush.msra.mxu3 %v36_v10 }
  0x17   :  { %57 = vmatpush.msra.mxu0 %v36_v10  ;;  %151 = vmatpush.msra.mxu1 %v36_v10 }
  0x18   :  { %155 = vmatpush.msra.mxu2 %v35_v11  ;;  %156 = vmatpush.msra.mxu3 %v35_v11 }
  0x19   :  { %58 = vmatpush.msra.mxu0 %v35_v11  ;;  %154 = vmatpush.msra.mxu1 %v35_v11 }
  0x1a   :  { %158 = vmatpush.msra.mxu2 %v34_v12  ;;  %159 = vmatpush.msra.mxu3 %v34_v12 }
  0x1b   :  { %59 = vmatpush.msra.mxu0 %v34_v12  ;;  %157 = vmatpush.msra.mxu1 %v34_v12 }
  0x1c   :  { %161 = vmatpush.msra.mxu2 %v33_v13  ;;  %162 = vmatpush.msra.mxu3 %v33_v13 }
  0x1d   :  { %60 = vmatpush.msra.mxu0 %v33_v13  ;;  %160 = vmatpush.msra.mxu1 %v33_v13 }
  0x1e   :  { %164 = vmatpush.msra.mxu2 %v32_v14  ;;  %165 = vmatpush.msra.mxu3 %v32_v14 }
  0x1f   :  { %61 = vmatpush.msra.mxu0 %v32_v14  ;;  %163 = vmatpush.msra.mxu1 %v32_v14 }
  0x20   :  { %167 = vmatpush.msra.mxu2 %v31_v15  ;;  %168 = vmatpush.msra.mxu3 %v31_v15 }
  0x21   :  { %69 = vmatmul.f32.vlgmr.msra.gmra.mxu2 %v29_v16  ;;  %72 = vmatmul.f32.vlgmr.msra.gmra.mxu3 %v30_v17 }
  0x22   :  { %62 = vmatpush.msra.mxu0 %v31_v15  ;;  %166 = vmatpush.msra.mxu1 %v31_v15 }
  0x23   :  { %63 = vmatmul.f32.vlgmr.msra.gmra.mxu0 %v27_v18  ;;  %66 = vmatmul.f32.vlgmr.msra.gmra.mxu1 %v28_v19 }
  0xa0   :  { %v64_v21 = vpop.f32.mrf.mxu0  ;;  %v67_v22 = vpop.f32.mrf.mxu1 }
  0xa1   :  { %v95_v23 = vadd.f32 %v172_v20, %v64_v21  ;;  %v96_v24 = vadd.f32 %v172_v20, %v67_v22 }
  0xa3   :  { %99 = vst [vmem:[#allocation3] sm:$0xff] %v95_v23 }
  0xa4   :  { %100 = vst [vmem:[#allocation3 + $0x8] sm:$0xff] %v96_v24  ;;  %v70_v25 = vpop.f32.mrf.mxu2  ;;  %v73_v26 = vpop.f32.mrf.mxu3 }
  0xa5   :  { %v97_v27 = vadd.f32 %v172_v20, %v70_v25  ;;  %v98_v28 = vadd.f32 %v172_v20, %v73_v26 }
  0xa7   :  { %101 = vst [vmem:[#allocation3 + $0x10] sm:$0xff] %v97_v27 }
  0xa8   :  { %102 = vst [vmem:[#allocation3 + $0x18] sm:$0xff] %v98_v28 }
  0xa9   :  { %115 = dma.vmem_to_hbm [thread:$0]  %s108_s27, 512, %s110_s0, [#allocation4], %s200_s2, %s200_s2, %s201_s30  }
  0xaa   :  { %197 = dma.done.wait [#allocation4], 512  }
  0xab   :  { %198 = vsyncadd [#allocation4], 4294966784 }
  0xac   :  { %120 = vsyncpa [#allocation4], 1 }

</bundles_post_ra>
